<compile_context>
chip_gen: v5e
topology: v5e:2x2
jax: 0.10.0
libtpu: 0.0.40
codegen_flags: <defaults>
</compile_context>

<pallas_src>
import math

import jax
import jax.numpy as jnp
from jax.experimental import pallas as pl
from jax.experimental.pallas import tpu as pltpu

EPS = 1e-5          # torch nn.LayerNorm default eps
NEG_INF = -1e30     # large finite negative for key-padding mask (NaN-free
                    # even when a whole key tile is padded; only fully-padded
                    # sequences deviate from PyTorch's NaN quirk)


# --------------------------------------------------------------------------
# per-generation tuning: VMEM budget + row-tile cap
# --------------------------------------------------------------------------

def _vmem_budget_bytes():
    try:
        cap = int(pltpu.get_tpu_info().vmem_capacity_bytes)
    except Exception:
        cap = 128 * 1024 * 1024
    return (cap * 3) // 4          # ~48 MiB on v7x, ~96 MiB on v5e/v6e


_VMEM_LIMIT = _vmem_budget_bytes()
_ROW_TILE_CAP = 512 if _VMEM_LIMIT >= 64 * 1024 * 1024 else 256


def _cparams(*dim_sem):
    return pltpu.CompilerParams(dimension_semantics=dim_sem,
                                vmem_limit_bytes=_VMEM_LIMIT)


# --------------------------------------------------------------------------
# single-buffering of grid-invariant operands (probed once)
# --------------------------------------------------------------------------

_BUFFERED1_OK = None


def _buffered1_supported():
    global _BUFFERED1_OK
    if _BUFFERED1_OK is None:
        try:
            def _probe(w_ref, o_ref):
                o_ref[...] = w_ref[...] + 1.0

            wspec = pl.BlockSpec((8, 128), lambda i: (0, 0),
                                 pipeline_mode=pl.Buffered(1))
            out = pl.pallas_call(
                _probe,
                grid=(2,),
                in_specs=[wspec],
                out_specs=pl.BlockSpec((8, 128), lambda i: (i, 0)),
                out_shape=jax.ShapeDtypeStruct((16, 128), jnp.float32),
            )(jnp.zeros((8, 128), jnp.float32))
            jax.block_until_ready(out)
            _BUFFERED1_OK = True
        except Exception:
            _BUFFERED1_OK = False
    return _BUFFERED1_OK


def _const_spec(shape):
    """BlockSpec for a grid-invariant (weight / bias / LN param) operand."""
    index_map = lambda *_: (0,) * len(shape)
    if _buffered1_supported():
        return pl.BlockSpec(shape, index_map, pipeline_mode=pl.Buffered(1))
    return pl.BlockSpec(shape, index_map)


# --------------------------------------------------------------------------
# tiling helpers
# --------------------------------------------------------------------------

def _round_up(n, m):
    return ((n + m - 1) // m) * m


def _row_plan(n):
    """(row_tile, padded_row_count) for a flattened (n, D) row grid."""
    if n < _ROW_TILE_CAP:
        tm = _round_up(n, 8)
        return tm, tm
    for cand in (512, 256, 128, 64):
        if cand <= _ROW_TILE_CAP and n % cand == 0:
            return cand, n
    return _ROW_TILE_CAP, _round_up(n, _ROW_TILE_CAP)


def _pad_rows(x, n_pad):
    n = x.shape[0]
    if n_pad == n:
        return x
    return jnp.pad(x, ((0, n_pad - n), (0, 0)))


def _seq_tile(t):
    """Sequence tile for attention; multiple of 128 or the full length."""
    for cand in (512, 256, 128):
        if t % cand == 0:
            return cand
    return t


# --------------------------------------------------------------------------
# in-kernel math helpers
# --------------------------------------------------------------------------

def _layer_norm(x, gamma, beta):
    mu = jnp.mean(x, axis=-1, keepdims=True)
    xc = x - mu
    var = jnp.mean(xc * xc, axis=-1, keepdims=True)
    return xc * jax.lax.rsqrt(var + EPS) * gamma + beta


def _erf(x):
    # Abramowitz & Stegun 7.1.26 (|err| < 1.5e-7); uses only exp/where/arith
    # so it lowers on every TPU generation without an erf primitive.
    a1, a2, a3, a4, a5 = (0.254829592, -0.284496736, 1.421413741,
                          -1.453152027, 1.061405429)
    p = 0.3275911
    z = jnp.where(x >= 0.0, x, -x)
    t = 1.0 / (1.0 + p * z)
    poly = ((((a5 * t + a4) * t + a3) * t + a2) * t + a1) * t
    y = 1.0 - poly * jnp.exp(-z * z)
    return jnp.where(x >= 0.0, y, -y)


def _gelu_exact(x):
    # torch.nn.functional.gelu default (erf-based, exact)
    return 0.5 * x * (1.0 + _erf(x * jnp.float32(1.0 / math.sqrt(2.0))))


# --------------------------------------------------------------------------
# kernel 1: embedding LayerNorm + padding zero-out (row tiled)
# --------------------------------------------------------------------------

def _embed_ln_kernel(x_ref, mask_ref, g_ref, b_ref, out_ref):
    normed = _layer_norm(x_ref[...], g_ref[...], b_ref[...])
    out_ref[...] = normed * (1.0 - mask_ref[...])    # mask: 1.0 where padding


def embed_layernorm(emb_sum_tbd, mask_tb, gamma, beta):
    T, B, D = emb_sum_tbd.shape
    N = T * B
    tm, n_pad = _row_plan(N)
    x = _pad_rows(emb_sum_tbd.reshape(N, D), n_pad)
    m = _pad_rows(mask_tb.reshape(N, 1), n_pad)
    out = pl.pallas_call(
        _embed_ln_kernel,
        grid=(n_pad // tm,),
        in_specs=[
            pl.BlockSpec((tm, D), lambda i: (i, 0)),
            pl.BlockSpec((tm, 1), lambda i: (i, 0)),
            _const_spec((1, D)),
            _const_spec((1, D)),
        ],
        out_specs=pl.BlockSpec((tm, D), lambda i: (i, 0)),
        out_shape=jax.ShapeDtypeStruct((n_pad, D), jnp.float32),
        compiler_params=_cparams("parallel"),
    )(x, m, gamma.reshape(1, D), beta.reshape(1, D))
    return out[:N].reshape(T, B, D)


# --------------------------------------------------------------------------
# kernel 2: fused QKV projection over flattened rows
# --------------------------------------------------------------------------

def _qkv_proj_kernel(x_ref, w_ref, b_ref, q_ref, k_ref, v_ref):
    xb = x_ref[...].astype(jnp.bfloat16)
    r = jnp.dot(xb, w_ref[...], preferred_element_type=jnp.float32) + b_ref[...]
    rb = r.astype(jnp.bfloat16)                  # 1/sqrt(hd) folded into Q cols
    D = q_ref.shape[-1]
    q_ref[...] = rb[:, 0 * D:1 * D]
    k_ref[...] = rb[:, 1 * D:2 * D]
    v_ref[...] = rb[:, 2 * D:3 * D]


def qkv_projection(x_rows, lp):
    N, D = x_rows.shape
    tm, n_pad = _row_plan(N)
    x = _pad_rows(x_rows, n_pad)
    row = pl.BlockSpec((tm, D), lambda i: (i, 0))
    q, k, v = pl.pallas_call(
        _qkv_proj_kernel,
        grid=(n_pad // tm,),
        in_specs=[row, _const_spec((D, 3 * D)), _const_spec((1, 3 * D))],
        out_specs=(row, row, row),
        out_shape=(jax.ShapeDtypeStruct((n_pad, D), jnp.bfloat16),) * 3,
        compiler_params=_cparams("parallel"),
    )(x, lp["wqkv_t"], lp["bqkv"])
    return q[:N], k[:N], v[:N]


# --------------------------------------------------------------------------
# kernel 3: flash-style attention core (online softmax, T-independent VMEM)
# --------------------------------------------------------------------------

def _flash_attn_kernel(q_ref, k_ref, v_ref, mask_ref, o_ref, m_sc, l_sc, acc_sc):
    ki = pl.program_id(3)

    @pl.when(ki == 0)
    def _init():
        m_sc[...] = jnp.full_like(m_sc, NEG_INF)
        l_sc[...] = jnp.zeros_like(l_sc)
        acc_sc[...] = jnp.zeros_like(acc_sc)

    q = q_ref[0, 0]                                           # (tq, hd) bf16
    k = k_ref[0, 0]                                           # (tk, hd) bf16
    s = jnp.dot(q, k.T, preferred_element_type=jnp.float32)   # (tq, tk) f32
    pad = mask_ref[0]                                         # (1, tk) f32
    s = jnp.where(pad > 0.5, NEG_INF, s)

    m_prev = m_sc[...]
    m_new = jnp.maximum(m_prev, jnp.max(s, axis=-1, keepdims=True))
    alpha = jnp.exp(m_prev - m_new)
    p = jnp.exp(s - m_new)
    l_sc[...] = alpha * l_sc[...] + jnp.sum(p, axis=-1, keepdims=True)
    acc_sc[...] = alpha * acc_sc[...] + jnp.dot(
        p.astype(jnp.bfloat16), v_ref[0, 0], preferred_element_type=jnp.float32)
    m_sc[...] = m_new

    @pl.when(ki == pl.num_programs(3) - 1)
    def _finalize():
        inv = pl.reciprocal(l_sc[...], approx=True)
        o_ref[0, 0] = (acc_sc[...] * inv).astype(o_ref.dtype)


def attention_core(q_bhtd, k_bhtd, v_bhtd, mask_b1t):
    B, H, T, hd = q_bhtd.shape
    tq = tk = _seq_tile(T)
    q_spec = pl.BlockSpec((1, 1, tq, hd), lambda b, h, qi, ki: (b, h, qi, 0))
    kv_spec = pl.BlockSpec((1, 1, tk, hd), lambda b, h, qi, ki: (b, h, ki, 0))
    return pl.pallas_call(
        _flash_attn_kernel,
        grid=(B, H, T // tq, T // tk),
        in_specs=[
            q_spec, kv_spec, kv_spec,
            pl.BlockSpec((1, 1, tk), lambda b, h, qi, ki: (b, 0, ki)),
        ],
        out_specs=pl.BlockSpec((1, 1, tq, hd),
                               lambda b, h, qi, ki: (b, h, qi, 0)),
        out_shape=jax.ShapeDtypeStruct((B, H, T, hd), jnp.bfloat16),
        scratch_shapes=[pltpu.VMEM((tq, 1), jnp.float32),
                        pltpu.VMEM((tq, 1), jnp.float32),
                        pltpu.VMEM((tq, hd), jnp.float32)],
        compiler_params=_cparams("parallel", "parallel", "parallel",
                                 "arbitrary"),
    )(q_bhtd, k_bhtd, v_bhtd, mask_b1t)


# --------------------------------------------------------------------------
# kernel 4: out-proj + LN1 + MLP (exact GELU) + LN2 over flattened rows
# --------------------------------------------------------------------------

def _outproj_mlp_kernel(x_ref, ctx_ref, wo_ref, bo_ref, ln1g_ref, ln1b_ref,
                        w1_ref, b1_ref, w2_ref, b2_ref, ln2g_ref, ln2b_ref,
                        out_ref):
    attn = jnp.dot(ctx_ref[...], wo_ref[...],
                   preferred_element_type=jnp.float32) + bo_ref[...]
    y = _layer_norm(x_ref[...] + attn, ln1g_ref[...], ln1b_ref[...])
    h = jnp.dot(y.astype(jnp.bfloat16), w1_ref[...],
                preferred_element_type=jnp.float32) + b1_ref[...]
    h = _gelu_exact(h)
    z = jnp.dot(h.astype(jnp.bfloat16), w2_ref[...],
                preferred_element_type=jnp.float32) + b2_ref[...]
    out_ref[...] = _layer_norm(y + z, ln2g_ref[...], ln2b_ref[...])


def outproj_mlp(x_rows, ctx_rows, lp):
    N, D = x_rows.shape
    F = lp["w1_t"].shape[1]
    tm, n_pad = _row_plan(N)
    x = _pad_rows(x_rows, n_pad)
    ctx = _pad_rows(ctx_rows, n_pad)
    row = pl.BlockSpec((tm, D), lambda i: (i, 0))
    # TODO(synk): for very large D on v7x (single-buffered weight set still
    # over budget) split F onto an 'arbitrary' reduction grid axis with an
    # f32 accumulator instead of keeping w1/w2 fully resident.
    out = pl.pallas_call(
        _outproj_mlp_kernel,
        grid=(n_pad // tm,),
        in_specs=[
            row, row,
            _const_spec((D, D)), _const_spec((1, D)),     # out proj
            _const_spec((1, D)), _const_spec((1, D)),     # attention LN
            _const_spec((D, F)), _const_spec((1, F)),     # mlp up
            _const_spec((F, D)), _const_spec((1, D)),     # mlp down
            _const_spec((1, D)), _const_spec((1, D)),     # final LN
        ],
        out_specs=row,
        out_shape=jax.ShapeDtypeStruct((n_pad, D), jnp.float32),
        compiler_params=_cparams("parallel"),
    )(x, ctx, lp["wo_t"], lp["bo"], lp["ln1_g"], lp["ln1_b"],
      lp["w1_t"], lp["b1"], lp["w2_t"], lp["b2"], lp["ln2_g"], lp["ln2_b"])
    return out[:N]


# --------------------------------------------------------------------------
# layer param preparation + one transformer layer
# --------------------------------------------------------------------------

def prepare_layer_params(p, D, num_heads):
    """Fuse QKV, pre-transpose + bf16-cast weights, fold 1/sqrt(hd) into Q."""
    hd = D // num_heads
    scale = 1.0 / math.sqrt(hd)
    col_scale = jnp.concatenate(
        [jnp.full((D,), scale, jnp.float32), jnp.ones((2 * D,), jnp.float32)])

    def r(a):
        return a.reshape(1, -1).astype(jnp.float32)

    return dict(
        wqkv_t=(p["wqkv"].T.astype(jnp.float32) * col_scale[None, :]
                ).astype(jnp.bfloat16),                       # (D, 3D)
        bqkv=r(p["bqkv"] * col_scale),                        # (1, 3D) f32
        wo_t=p["wo"].T.astype(jnp.bfloat16), bo=r(p["bo"]),
        ln1_g=r(p["ln1_g"]), ln1_b=r(p["ln1_b"]),
        w1_t=p["w1"].T.astype(jnp.bfloat16), b1=r(p["b1"]),
        w2_t=p["w2"].T.astype(jnp.bfloat16), b2=r(p["b2"]),
        ln2_g=r(p["ln2_g"]), ln2_b=r(p["ln2_b"]),
    )


def transformer_layer(x_tbd, mask_b1t, lp, num_heads):
    T, B, D = x_tbd.shape
    hd = D // num_heads
    x_rows = x_tbd.reshape(T * B, D)
    q, k, v = qkv_projection(x_rows, lp)              # (T*B, D) bf16 each

    # Head-major layout plumbing (wrapper-side, bf16).
    # TODO(synk): read lane-dense (1,T,D) blocks and split heads in-kernel
    # once lane-splitting reshapes lower reliably in Mosaic; that would
    # delete these transposes and the hd<128 lane underfill in attention.
    def to_heads(a):
        return a.reshape(T, B, num_heads, hd).transpose(1, 2, 0, 3)

    ctx = attention_core(to_heads(q), to_heads(k), to_heads(v), mask_b1t)
    ctx_rows = ctx.transpose(2, 0, 1, 3).reshape(T * B, D)
    y = outproj_mlp(x_rows, ctx_rows, lp)
    return y.reshape(T, B, D)


# --------------------------------------------------------------------------
# full forward
# --------------------------------------------------------------------------

def accelerator_transformer_forward(tokens, params, padding_idx, num_heads):
    """Returns List[(T, B, D)] states: input encoding plus one per layer."""
    tokens_tb = tokens.T                                    # (T, B), seq-major
    pad_mask_tb = tokens_tb == padding_idx
    mask_tb_f = pad_mask_tb.astype(jnp.float32)

    # token embedding (pad row of the table is zero, like nn.Embedding)
    embedded = jnp.take(params["token_emb"], tokens_tb, axis=0)     # (T, B, D)

    # fairseq-style learned positional embedding
    nonpad = (~pad_mask_tb).astype(jnp.int32)
    positions = jnp.cumsum(nonpad, axis=0) * nonpad + padding_idx   # (T, B)
    embedded_pos = jnp.take(params["pos_emb"], positions, axis=0)   # (T, B, D)

    # embedding LayerNorm + zeroing of padded positions (dropout = identity
    # in eval mode); computed directly in seq-major layout so the returned
    # states need no per-state transposes.
    encoded = embed_layernorm(embedded + embedded_pos, mask_tb_f,
                              params["emb_ln_g"], params["emb_ln_b"])

    D = encoded.shape[-1]
    mask_b1t = mask_tb_f.T[:, None, :]                      # (B, 1, T)
    layer_params = [prepare_layer_params(p, D, num_heads)
                    for p in params["layers"]]

    states = [encoded]
    x = encoded
    for lp in layer_params:
        x = transformer_layer(x, mask_b1t, lp, num_heads)
        states.append(x)
    return states                                            # each (T, B, D)


# --------------------------------------------------------------------------
# parameter init
# --------------------------------------------------------------------------

def init_params(key, vocab_size, D, ffn, n_layers, pad_idx, max_positions):
    keys = jax.random.split(key, 4 + n_layers)

    def nrm(k, shape, scale=0.02):
        return scale * jax.random.normal(k, shape, dtype=jnp.float32)

    token_emb = nrm(keys[0], (vocab_size, D)).at[pad_idx].set(0.0)
    pos_emb = nrm(keys[1], (max_positions, D)).at[pad_idx].set(0.0)
    emb_ln_g = 1.0 + nrm(keys[2], (D,), 0.1)
    emb_ln_b = nrm(keys[3], (D,), 0.1)

    layers = []
    for i in range(n_layers):
        lk = jax.random.split(keys[4 + i], 12)
        layers.append(dict(
            wqkv=nrm(lk[0], (3 * D, D)), bqkv=nrm(lk[1], (3 * D,)),
            wo=nrm(lk[2], (D, D)), bo=nrm(lk[3], (D,)),
            ln1_g=1.0 + nrm(lk[4], (D,), 0.1), ln1_b=nrm(lk[5], (D,), 0.1),
            w1=nrm(lk[6], (ffn, D)), b1=nrm(lk[7], (ffn,)),
            w2=nrm(lk[8], (D, ffn)), b2=nrm(lk[9], (D,)),
            ln2_g=1.0 + nrm(lk[10], (D,), 0.1), ln2_b=nrm(lk[11], (D,), 0.1),
        ))
    return dict(token_emb=token_emb, pos_emb=pos_emb,
                emb_ln_g=emb_ln_g, emb_ln_b=emb_ln_b, layers=layers)


# --------------------------------------------------------------------------
# main
# --------------------------------------------------------------------------

if __name__ == "__main__":
    B, T, D = 2, 8, 32
    NUM_HEADS = 4
    FFN = 4 * D
    N_LAYERS = 2
    VOCAB = 100
    PAD_IDX = 1
    MAX_POS = T + PAD_IDX + 1

    root = jax.random.PRNGKey(0)
    k_tok, k_par = jax.random.split(root)

    tokens = jax.random.randint(k_tok, (B, T), 2, VOCAB, dtype=jnp.int32)
    # real padding so the key-padding-mask path is exercised
    tokens = tokens.at[0, 6:].set(PAD_IDX)
    tokens = tokens.at[1, 5:].set(PAD_IDX)

    params = init_params(k_par, VOCAB, D, FFN, N_LAYERS, PAD_IDX, MAX_POS)

    states = accelerator_transformer_forward(tokens, params, PAD_IDX, NUM_HEADS)
    states = [jax.block_until_ready(s) for s in states]

    assert len(states) == N_LAYERS + 1
    for s in states:
        assert s.shape == (T, B, D)
        assert bool(jnp.all(jnp.isfinite(s)))
    # padded positions of the input encoding are zeroed exactly
    pad_mask_tb = (tokens.T == PAD_IDX)
    assert bool(jnp.all(jnp.where(pad_mask_tb[..., None], states[0], 0.0) == 0.0))
    print("KERNEL_OK")
</pallas_src>

<mosaic_0001>
module attributes {stable_mosaic.version = 11 : i64} {
  func.func @_probe(%arg0: i32, %arg1: memref<8x128xf32, #tpu.memory_space<vmem>>, %arg2: memref<8x128xf32, #tpu.memory_space<vmem>>) attributes {dimension_semantics = [#tpu.dimension_semantics<arbitrary>], iteration_bounds = array<i64: 2>, scalar_prefetch = 0 : i64, scratch_operands = 0 : i64, tpu.core_type = #tpu.core_type<tc>, window_params = [{pipeline_mode = #tpu.pipeline_mode<synchronous>, transform_indices = @transform_0, window_bounds = array<i64: 8, 128>}, {transform_indices = @transform_1, window_bounds = array<i64: 8, 128>}]} {
    %c0 = arith.constant 0 : index
    %c0_0 = arith.constant 0 : index
    %0 = vector.load %arg1[%c0, %c0_0] : memref<8x128xf32, #tpu.memory_space<vmem>>, vector<8x128xf32>
    %cst = arith.constant 1.000000e+00 : f32
    %1 = vector.broadcast %cst : f32 to vector<8x128xf32>
    %2 = arith.addf %0, %1 : vector<8x128xf32>
    %c0_1 = arith.constant 0 : index
    %c0_2 = arith.constant 0 : index
    %3 = vector.load %arg2[%c0_1, %c0_2] : memref<8x128xf32, #tpu.memory_space<vmem>>, vector<8x128xf32>
    tpu.vector_store %arg2[%c0_1, %c0_2], %2 {strides = array<i32>} : memref<8x128xf32, #tpu.memory_space<vmem>>, vector<8x128xf32>,
    return
  }
  func.func @transform_0(%arg0: i32) -> (i32, i32) {
    %c0_i32 = arith.constant 0 : i32
    %c0_i32_0 = arith.constant 0 : i32
    %c0_i32_1 = arith.constant 0 : i32
    return %c0_i32, %c0_i32_0 : i32, i32
  }
  func.func @transform_1(%arg0: i32) -> (i32, i32) {
    %c0_i32 = arith.constant 0 : i32
    %c0_i32_0 = arith.constant 0 : i32
    return %arg0, %c0_i32 : i32, i32
  }
}

module attributes {stable_mosaic.version = 11 : i64} {
  func.func @_embed_ln_kernel(%arg0: i32, %arg1: memref<16x32xf32, #tpu.memory_space<vmem>>, %arg2: memref<16x1xf32, #tpu.memory_space<vmem>>, %arg3: memref<1x32xf32, #tpu.memory_space<vmem>>, %arg4: memref<1x32xf32, #tpu.memory_space<vmem>>, %arg5: memref<16x32xf32, #tpu.memory_space<vmem>>) attributes {dimension_semantics = [#tpu.dimension_semantics<parallel>], iteration_bounds = array<i64: 1>, scalar_prefetch = 0 : i64, scratch_operands = 0 : i64, tpu.core_type = #tpu.core_type<tc>, window_params = [{transform_indices = @transform_0, window_bounds = array<i64: 16, 32>}, {transform_indices = @transform_1, window_bounds = array<i64: 16, 1>}, {pipeline_mode = #tpu.pipeline_mode<synchronous>, transform_indices = @transform_2, window_bounds = array<i64: 1, 32>}, {pipeline_mode = #tpu.pipeline_mode<synchronous>, transform_indices = @transform_3, window_bounds = array<i64: 1, 32>}, {transform_indices = @transform_4, window_bounds = array<i64: 16, 32>}]} {
    %c0 = arith.constant 0 : index
    %c0_0 = arith.constant 0 : index
    %0 = vector.load %arg1[%c0, %c0_0] : memref<16x32xf32, #tpu.memory_space<vmem>>, vector<16x32xf32>
    %c0_1 = arith.constant 0 : index
    %c0_2 = arith.constant 0 : index
    %1 = vector.load %arg3[%c0_1, %c0_2] : memref<1x32xf32, #tpu.memory_space<vmem>>, vector<1x32xf32>
    %c0_3 = arith.constant 0 : index
    %c0_4 = arith.constant 0 : index
    %2 = vector.load %arg4[%c0_3, %c0_4] : memref<1x32xf32, #tpu.memory_space<vmem>>, vector<1x32xf32>
    %cst = arith.constant dense<0.000000e+00> : vector<16xf32>
    %3 = vector.multi_reduction <add>, %0, %cst [1] : vector<16x32xf32> to vector<16xf32>
    %4 = vector.shape_cast %3 : vector<16xf32> to vector<16x1xf32>
    %cst_5 = arith.constant 3.200000e+01 : f32
    %5 = vector.broadcast %cst_5 : f32 to vector<16x1xf32>
    %6 = arith.divf %4, %5 : vector<16x1xf32>
    %7 = vector.broadcast %6 : vector<16x1xf32> to vector<16x32xf32>
    %8 = arith.subf %0, %7 : vector<16x32xf32>
    %9 = arith.mulf %8, %8 : vector<16x32xf32>
    %cst_6 = arith.constant dense<0.000000e+00> : vector<16xf32>
    %10 = vector.multi_reduction <add>, %9, %cst_6 [1] : vector<16x32xf32> to vector<16xf32>
    %11 = vector.shape_cast %10 : vector<16xf32> to vector<16x1xf32>
    %cst_7 = arith.constant 3.200000e+01 : f32
    %12 = vector.broadcast %cst_7 : f32 to vector<16x1xf32>
    %13 = arith.divf %11, %12 : vector<16x1xf32>
    %cst_8 = arith.constant 9.99999974E-6 : f32
    %14 = vector.broadcast %cst_8 : f32 to vector<16x1xf32>
    %15 = arith.addf %13, %14 : vector<16x1xf32>
    %16 = math.rsqrt %15 : vector<16x1xf32>
    %17 = vector.broadcast %16 : vector<16x1xf32> to vector<16x32xf32>
    %18 = arith.mulf %8, %17 : vector<16x32xf32>
    %19 = vector.broadcast %1 : vector<1x32xf32> to vector<16x32xf32>
    %20 = arith.mulf %18, %19 : vector<16x32xf32>
    %21 = vector.broadcast %2 : vector<1x32xf32> to vector<16x32xf32>
    %22 = arith.addf %20, %21 : vector<16x32xf32>
    %c0_9 = arith.constant 0 : index
    %c0_10 = arith.constant 0 : index
    %23 = vector.load %arg2[%c0_9, %c0_10] : memref<16x1xf32, #tpu.memory_space<vmem>>, vector<16x1xf32>
    %cst_11 = arith.constant 1.000000e+00 : f32
    %24 = vector.broadcast %cst_11 : f32 to vector<16x1xf32>
    %25 = arith.subf %24, %23 : vector<16x1xf32>
    %26 = vector.broadcast %25 : vector<16x1xf32> to vector<16x32xf32>
    %27 = arith.mulf %22, %26 : vector<16x32xf32>
    %c0_12 = arith.constant 0 : index
    %c0_13 = arith.constant 0 : index
    %28 = vector.load %arg5[%c0_12, %c0_13] : memref<16x32xf32, #tpu.memory_space<vmem>>, vector<16x32xf32>
    tpu.vector_store %arg5[%c0_12, %c0_13], %27 {strides = array<i32>} : memref<16x32xf32, #tpu.memory_space<vmem>>, vector<16x32xf32>,
    return
  }
  func.func @transform_0(%arg0: i32) -> (i32, i32) {
    %c0_i32 = arith.constant 0 : i32
    %c0_i32_0 = arith.constant 0 : i32
    return %arg0, %c0_i32 : i32, i32
  }
  func.func @transform_1(%arg0: i32) -> (i32, i32) {
    %c0_i32 = arith.constant 0 : i32
    %c0_i32_0 = arith.constant 0 : i32
    return %arg0, %c0_i32 : i32, i32
  }
  func.func @transform_2(%arg0: i32) -> (i32, i32) {
    %c0_i32 = arith.constant 0 : i32
    %c0_i32_0 = arith.constant 0 : i32
    %c0_i32_1 = arith.constant 0 : i32
    return %c0_i32, %c0_i32_0 : i32, i32
  }
  func.func @transform_3(%arg0: i32) -> (i32, i32) {
    %c0_i32 = arith.constant 0 : i32
    %c0_i32_0 = arith.constant 0 : i32
    %c0_i32_1 = arith.constant 0 : i32
    return %c0_i32, %c0_i32_0 : i32, i32
  }
  func.func @transform_4(%arg0: i32) -> (i32, i32) {
    %c0_i32 = arith.constant 0 : i32
    %c0_i32_0 = arith.constant 0 : i32
    return %arg0, %c0_i32 : i32, i32
  }
}

</mosaic_0001>

<bundles_post_ra>
// kernel: tpu_custom_call.1
= control target key start
LH: loop header
LB: loop body
LE: loop exit
PB: predicated region body
PF: predicated region fallthrough
CT: control target
= control target key end

     0   :  { %6 = vsyncpa [#allocation3], 0  ;;  %s441_s0 = inlined_call_operand.hbm [shape: f32[8,128], index: 0, kind: input, shape index: {}]   ;;  %s442_s1 = inlined_call_operand.hbm [shape: f32[16,128], index: 1, kind: output, shape index: {}]  }
   0x1   :  { %7 = vsyncpa [#allocation4], 0 }
   0x2   :  { %9 = vsyncpa [#allocation4 + $0x1], 0  ;;  %s357_s6 = smov 0   ;;  %s359_s7 = smov 0  }
   0x3   :  { %s361_s8 = smov 0   ;;  %s363_s9 = smov 0  }
   0x4 LB: > { %s378_s10 = sadd.s32 4294967295, %s344_s9   ;;  %s188_s11 = sadd.s32 4294967294, %s344_s9   ;;  %s344_s9 = sphi %s363_s9, %s448_s9   ;;  %s340_s8 = sphi %s361_s8, %s447_s8   ;;  %s336_s7 = sphi %s359_s7, %s446_s7   ;;  %s332_s6 = sphi %s357_s6, %s445_s6  }
   0x5   : > { %s382_s12 = sadd.s32 1, %s344_s9   ;;  %s43_s13 = sadd.s32 1, %s340_s8 }
   0x6   : > { %s40_s14 = ssub.s32 %s344_s9, %s382_s12  ;;  %p53_p0 = scmp.ne.s32.totalorder %s340_s8, %s336_s7 }
   0x7   : > { %p41_p1 = scmp.eq.s32.totalorder %s40_s14, 0  ;;  %p54_p2 = scmp.eq.s32.totalorder %s378_s10, 1 }
   0x8   : > { %p59_p3 = scmp.ne.s32.totalorder %s336_s7, %s332_s6  ;;  %p60_p4 = scmp.eq.s32.totalorder %s188_s11, 1 }
   0x9   : > { %s393_s15 = scalar_select %p41_p1, %s340_s8, %s43_s13  }
   0xa   : > { %p395_p5 = por %p54_p2, %p53_p0  ;;  %p399_p6 = por %p60_p4, %p59_p3 }
   0xb   : > { %p189_p7 = scmp.ge.s32.totalorder %s344_s9, 1  ;;  %p67_p8 = scmp.lt.s32.totalorder %s344_s9, 3 }
   0xc   : > { %p212_p9 = scmp.eq.s32.totalorder %s378_s10, 0  ;;  %s79_s20 = sshll.u32 %s441_s0, 4  ;;  %s80_s20 = int_to_ptr.hbm [resolvable:$true] %s79_s20 }
   0xd   : > { %p68_p10 = pnand %p189_p7, %p67_p8  ;;  %s346_s21 = smov [#allocation2]  }
   0xe   : > { %s81_s22 = sshll.u32 %s346_s21, 4  ;;  %s82_s22 = int_to_ptr.vmem [resolvable:$true] %s81_s22 }
   0xf   : > { %p204_p11 = pneg %p68_p10  ;;  %94 = sbr.rel (%p68_p10) target bundleno = 37 (0x25), region = 24 }
  0x11   : > { %p205_p12 = pnand %p212_p9, %p204_p11 }
  0x13   : > { %207 = dma.hbm_to_vmem [thread:$0]  (!%p205_p12), %s80_s20, 128, %s82_s22, [#allocation3]  }
  0x14   : > { %323 = dma.done.wait (%p212_p9), [#allocation3], 128  }
  0x15   : > { %325 = vsyncadd (%p212_p9), [#allocation3], 4294967168  ;;  %s107_s23 = sand.u32 1, %s336_s7   ;;  %s195_s24 = sshll.u32 %s378_s10, 3  ;;  %v110_v0 = vld [vmem:[#allocation2] sm:$0xff] }
  0x16   : > { %s193_s25 = sshll.u32 %s107_s23, 3  ;;  %s124_s28 = scalar_lea.hbm %s442_s1, %s195_s24  ;;  %v111_v1 = vadd.f32 1.0, %v110_v0 }
  0x17   : > { %s109_s29 = scalar_lea.vmem [#allocation5], %s193_s25  ;;  %s128_s2 = sshll.u32 %s124_s28, 4  ;;  %s129_s2 = int_to_ptr.hbm [resolvable:$true] %s128_s2 }
  0x18   : > { %s126_s30 = sshll.u32 %s109_s29, 4  ;;  %112 = vst [vmem:[%s109_s29] sm:$0xff] %v111_v1  ;;  %s114_s3 = scalar_lea.sflag [#allocation4], %s107_s23  ;;  %s127_s30 = int_to_ptr.vmem [resolvable:$true] %s126_s30 }
  0x19   : > { %s292_s4 = sshra.s32 %s129_s2, 4  ;;  %s298_s13 = scalar_lea.hbm %s442_s1, 16  ;;  %s293_s4 = int_to_ptr.hbm [resolvable:$true] %s292_s4 }
  0x1a   : > { %s294_s5 = scalar_lea.hbm %s293_s4, 8  ;;  %p299_p2 = scmp.lt.s32.totalorder %s293_s4, %s442_s1 }
  0x1b   : > { %p295_p13 = scmp.ne.s32.totalorder %s293_s4, %s294_s5  ;;  %p300_p3 = scmp.lt.s32.totalorder %s298_s13, %s294_s5 }
  0x1d   : > { %p296_p0 = pnand %p295_p13, %p395_p5  ;;  %p301_p4 = por %p300_p3, %p299_p2 }
  0x1f   : > { %p297_p1 = pneg %p296_p0 }
  0x21   : > { %p302_p7 = pnand %p301_p4, %p297_p1 }
  0x23   : > { %305 = shalt.err (!%p302_p7)
}
  0x24   : > { %202 = dma.vmem_to_hbm [thread:$0]  (%p395_p5), %s127_s30, 128, %s129_s2, %s114_s3  }
  0x25 PF: > { %p214_p8 = scmp.ge.s32.totalorder %s344_s9, 2  ;;  %s140_s19 = sand.u32 1, %s332_s6  }
  0x26   : > { %s141_s20 = scalar_lea.sflag [#allocation4], %s140_s19 }
  0x27   : > { %p209_p9 = pnand %p214_p8, %p399_p6 }
  0x29   : > { %p210_p10 = pneg %p209_p9 }
  0x2b   : > { %327 = dma.done.wait (%p210_p10), %s141_s20, 128  }
  0x2c   : > { %329 = vsyncadd (%p210_p10), %s141_s20, 4294967168  ;;  %p12_p11 = scmp.ge.s32.totalorder %s382_s12, 4   ;;  %s445_s6 = smov %s336_s7 }
  0x2d   : > { %s446_s7 = smov %s340_s8  ;;  %s447_s8 = smov %s393_s15 }
  0x2e   : > { %s448_s9 = smov %s382_s12  ;;  %14 = sbr.rel (!%p12_p11) target bundleno = 4 (0x4), region = 61 }
  0x33   :  { %147 = vsyncpa [#allocation3], 1 }
  0x34   :  { %149 = vsyncpa [#allocation3 + $0x1], 1 }
  0x35   :  { %150 = vsyncpa [#allocation4], 1 }
  0x36   :  { %152 = vsyncpa [#allocation4 + $0x1], 1 }

// kernel: tpu_custom_call.1
= control target key start
LH: loop header
LB: loop body
LE: loop exit
PB: predicated region body
PF: predicated region fallthrough
CT: control target
= control target key end

     0   :  { %vm22_vm0 = vcmask 261120   ;;  %s218_s0 = inlined_call_operand.vmem [shape: f32[16,32], index: 0, kind: input, shape index: {}]   ;;  %s219_s1 = inlined_call_operand.vmem [shape: f32[16,1], index: 1, kind: input, shape index: {}]   ;;  %s220_s2 = inlined_call_operand.vmem [shape: f32[1,32], index: 2, kind: input, shape index: {}]   ;;  %s221_s3 = inlined_call_operand.vmem [shape: f32[1,32], index: 3, kind: input, shape index: {}]   ;;  %s222_s4 = inlined_call_operand.hbm [shape: f32[16,32], index: 4, kind: output, shape index: {}]  }
   0x1   :  { %v18_v0 = vld [vmem:[%s218_s0] sm:$0xff] }
   0x2   :  { %v23_v1 = vsel %vm22_vm0, %v18_v0, 0.0 }
   0x3   :  { %9 = vsyncpa [#allocation3], 0  ;;  %24 = vadd.xlane.f32.xlu0 %v23_v1  ;;  %v19_v2 = vld [vmem:[%s218_s0 + $0x8] sm:$0xff]  ;;  %v161_v4 = vmov 32.0   ;;  %v84_v7 = vld [vmem:[%s219_s1] sm:$0xff]  ;;  %v162_v8 = vmov 0  }
   0x4   :  { %v26_v3 = vsel %vm22_vm0, %v19_v2, 0.0  ;;  %129 = vrcp.f32 %v161_v4  ;;  %125 = vset.pattern.permute.xlu2 %v162_v8  ;;  %v86_v9 = vsub.f32 1.0, %v84_v7  ;;  %126 = vset.pattern.permute.xlu0 %v162_v8  ;;  %v85_v11 = vld [vmem:[%s219_s1 + $0x8] sm:$0xff]  ;;  %v127_v40 = vld [vmem:[%s220_s2] ss:$0 sm:$0xff]  ;;  %s163_s2 = smov [#allocation2]  }
   0x5   :  { %v87_v13 = vsub.f32 1.0, %v85_v11  ;;  %v128_v44 = vld [vmem:[%s221_s3] ss:$0 sm:$0xff]  ;;  %s106_s25 = sshll.u32 %s163_s2, 4  ;;  %s108_s3 = sshll.u32 %s222_s4, 4  ;;  %s107_s25 = int_to_ptr.vmem [resolvable:$true] %s106_s25  ;;  %s109_s3 = int_to_ptr.hbm [resolvable:$true] %s108_s3 }
   0x6   :  { %90 = vperm.xlu2 %125, %v86_v9   ;;  %s164_s28 = smov 128   ;;  %s165_s29 = smov 8  }
   0xa   :  { %v130_v5 = vpop.eup %129 }
   0xb   :  { %27 = vadd.xlane.f32.xlu0 %v26_v3  ;;  %v30_v6 = vmul.f32 32.0, %v130_v5  ;;  %vm34_vm1 = vweird.f32 %v130_v5 }
   0xd   :  { %v31_v10 = vsub.f32 1.0, %v30_v6 }
   0xe   :  { %95 = vperm.xlu2 %125, %v87_v13  }
   0xf   :  { %v32_v12 = vmul.f32 %v130_v5, %v31_v10 }
  0x11   :  { %v33_v14 = vadd.f32 %v130_v5, %v32_v12 }
  0x13   :  { %v35_v15 = vsel %vm34_vm1, %v130_v5, %v33_v14 }
  0x60   :  { %v91_v48 = vpop.permute.xlu2 %90 }
  0x68   :  { %v96_v56 = vpop.permute.xlu2 %95 }
  0x76   :  { %v25_v16 = vpop.xlane.xlu0 %24 }
  0x77   :  { %v36_v17 = vmul.f32 %v35_v15, %v25_v16 }
  0x79   :  { %v38_v18 = vsub.f32 %v18_v0, %v36_v17 }
  0x7b   :  { %v40_v19 = vmul.f32 %v38_v18, %v38_v18 }
  0x7d   :  { %v42_v20 = vsel %vm22_vm0, %v40_v19, 0.0 }
  0x7e   :  { %43 = vadd.xlane.f32.xlu1 %v42_v20  ;;  %v28_v21 = vpop.xlane.xlu0 %27 }
  0x7f   :  { %v37_v22 = vmul.f32 %v35_v15, %v28_v21 }
  0x81   :  { %v39_v23 = vsub.f32 %v19_v2, %v37_v22 }
  0x83   :  { %v41_v24 = vmul.f32 %v39_v23, %v39_v23 }
  0x85   :  { %v45_v25 = vsel %vm22_vm0, %v41_v24, 0.0 }
  0x86   :  { %46 = vadd.xlane.f32.xlu1 %v45_v25 }
  0xf1   :  { %v44_v26 = vpop.xlane.xlu1 %43 }
  0xf2   :  { %v48_v27 = vmul.f32 %v44_v26, %v35_v15 }
  0xf4   :  { %v50_v28 = vadd.f32 1e-05, %v48_v27 }
  0xf6   :  { %131 = vrsqrt.f32 %v50_v28  ;;  %vm58_vm3 = vweird.f32 %v50_v28 }
  0xf9   :  { %v47_v29 = vpop.xlane.xlu1 %46 }
  0xfa   :  { %v49_v30 = vmul.f32 %v47_v29, %v35_v15 }
  0xfc   :  { %v132_v31 = vpop.eup %131  ;;  %v51_v32 = vadd.f32 1e-05, %v49_v30 }
  0xfd   :  { %v53_v33 = vmul.f32 %v132_v31, %v50_v28  ;;  %vm59_vm2 = vweird.f32 %v132_v31 }
  0xfe   :  { %133 = vrsqrt.f32 %v51_v32  ;;  %vm60_vm4 = vmor %vm58_vm3, %vm59_vm2  ;;  %vm68_vm6 = vweird.f32 %v51_v32 }
  0xff   :  { %v54_v34 = vmul.f32 %v132_v31, %v53_v33 }
 0x101   :  { %v55_v35 = vmul.f32 0.5, %v54_v34 }
 0x103   :  { %v56_v36 = vsub.f32 1.5, %v55_v35 }
 0x104   :  { %v134_v37 = vpop.eup %133 }
 0x105   :  { %v57_v38 = vmul.f32 %v132_v31, %v56_v36  ;;  %v63_v39 = vmul.f32 %v134_v37, %v51_v32  ;;  %vm69_vm5 = vweird.f32 %v134_v37 }
 0x106   :  { %vm70_vm7 = vmor %vm68_vm6, %vm69_vm5 }
 0x107   :  { %v64_v41 = vmul.f32 %v134_v37, %v63_v39  ;;  %v61_v42 = vsel %vm60_vm4, %v132_v31, %v57_v38 }
 0x108   :  { %v72_v43 = vmul.f32 %v61_v42, %v38_v18 }
 0x109   :  { %v65_v45 = vmul.f32 0.5, %v64_v41 }
 0x10a   :  { %v77_v46 = vmul.f32 %v127_v40, %v72_v43 }
 0x10b   :  { %v66_v47 = vsub.f32 1.5, %v65_v45 }
 0x10c   :  { %v82_v49 = vadd.f32 %v128_v44, %v77_v46 }
 0x10d   :  { %v67_v50 = vmul.f32 %v134_v37, %v66_v47 }
 0x10e   :  { %v98_v51 = vmul.f32 %v91_v48, %v82_v49 }
 0x10f   :  { %v71_v52 = vsel %vm70_vm7, %v134_v37, %v67_v50 }
 0x110   :  { %100 = vst.msk [vmem:[#allocation2] sm:$0xff] %vm22_vm0, %v98_v51  ;;  %v73_v53 = vmul.f32 %v71_v52, %v39_v23 }
 0x112   :  { %v78_v54 = vmul.f32 %v127_v40, %v73_v53 }
 0x114   :  { %v83_v55 = vadd.f32 %v128_v44, %v78_v54 }
 0x116   :  { %v99_v57 = vmul.f32 %v96_v56, %v83_v55 }
 0x118   :  { %101 = vst.msk [vmem:[#allocation2 + $0x8] sm:$0xff] %vm22_vm0, %v99_v57 }
 0x119   :  { %114 = dma.vmem_to_hbm [thread:$0]  %s107_s25, 256, %s109_s3, [#allocation3], %s164_s28, %s164_s28, %s165_s29  }
 0x11a   :  { %159 = dma.done.wait [#allocation3], 256  }
 0x11b   :  { %160 = vsyncadd [#allocation3], 4294967040 }
 0x11c   :  { %119 = vsyncpa [#allocation3], 1 }

</bundles_post_ra>
